<compile_context>
chip_gen: v5e
topology: v5e:2x2
jax: 0.10.0
libtpu: 0.0.40
codegen_flags: <defaults>
</compile_context>

<pallas_src>
import functools
import math

import jax
import jax.numpy as jnp
import numpy as np
from jax.experimental import pallas as pl
from jax.experimental.pallas import tpu as pltpu


def make_positional_encoding(d_model: int, seq_length: int,
                             dtype=jnp.float32) -> jnp.ndarray:
    """Builds pe with shape (seq_length, 1, d_model), matching the PyTorch buffer."""
    assert d_model % 2 == 0, "PositionalEncoding requires an even d_model"
    position = jnp.arange(seq_length, dtype=jnp.float32)[:, None]                 # (S, 1)
    div_term = jnp.exp(
        jnp.arange(0, d_model, 2, dtype=jnp.float32)
        * jnp.float32(-math.log(10000.0) / d_model)
    )                                                                             # (D/2,)
    angles = position * div_term                                                  # (S, D/2)
    pe = jnp.zeros((seq_length, d_model), dtype=jnp.float32)
    pe = pe.at[:, 0::2].set(jnp.sin(angles))
    pe = pe.at[:, 1::2].set(jnp.cos(angles))
    # unsqueeze(0).transpose(0, -2): (1, S, D) -> (S, 1, D)
    return pe[:, None, :].astype(dtype)


def _pe_add_kernel(x_ref, pe_ref, o_ref):
    # Works for both layouts:
    #   flat: x (ts, B*D) + pe (ts, B*D)
    #   3-D : x (ts, B, D) + pe (ts, 1, D)  (broadcast over the batch dim)
    o_ref[...] = (x_ref[...] + pe_ref[...]).astype(o_ref.dtype)


def _vmem_capacity_bytes() -> int:
    try:
        return int(pltpu.get_tpu_info().vmem_capacity_bytes)
    except Exception:
        return 64 * 1024 * 1024   # conservative: v7x per-TensorCore VMEM


def _choose_seq_tile(S: int, row_bytes: int, vmem_cap: int) -> int:
    """Rows of the sequence axis per grid step.

    Targets ~1/12 of VMEM per tile so the ~6 live tile buffers (double-buffered
    x-in, pe-in, out) use about half of VMEM, while amortizing the ~0.35 us
    per-grid-step overhead with large tiles.
    """
    target_tile_bytes = max(1, vmem_cap // 12)
    row_bytes = max(1, row_bytes)
    rows = max(1, target_tile_bytes // row_bytes)
    rows = min(rows, S)
    # Keep >= 4 grid steps (>= 2 per v7x TensorCore under "parallel") whenever the
    # data is big enough that each of the 4 tiles is still a useful size.
    if S * row_bytes >= 4 * (1 << 20):
        rows = min(rows, pl.cdiv(S, 4))
    rows = max(1, rows)
    if rows >= 8:
        rows -= rows % 8
        # Prefer a multiple-of-8 divisor of S near the target: no ragged last tile.
        cand, best = rows, None
        for _ in range(512):
            if cand < 8 or cand < rows // 2:
                break
            if S % cand == 0:
                best = cand
                break
            cand -= 8
        if best is not None:
            rows = best
    elif S <= 8:
        rows = S
    else:
        rows = 8   # keep the sublane dim a multiple of 8
    return max(1, min(rows, S))


def positional_encoding_forward(x: jnp.ndarray, pe: jnp.ndarray,
                                *, seq_tile: int | None = None,
                                in_place: bool = False) -> jnp.ndarray:
    """x: (S, B, D), pe: (S, 1, D) -> (S, B, D)."""
    S, B, D = x.shape
    assert pe.shape == (S, 1, D), f"pe shape {pe.shape} != {(S, 1, D)}"

    # Add in the I/O dtype (removes in-kernel casts; halves pe bytes for bf16 models).
    pe = pe.astype(x.dtype)

    # Minor-dim density: with (B, D) as the vreg minor dims, B % 8 != 0 leaves sublanes
    # masked (vst becomes the binding slot). Flatten to (S, B*D) and pre-tile pe; the
    # extra pe read (xB) is cheaper than quartered store bandwidth for small B.
    flatten = (B % 8 != 0) or (D % 128 != 0 and B <= 8)
    if flatten:
        x_k = x.reshape(S, B * D)
        pe_k = jnp.tile(pe.reshape(S, D), (1, B))        # pe_k[s, b*D + d] = pe[s, d]
        x_block = lambda ts: (ts, B * D)
        pe_block = lambda ts: (ts, B * D)
        index_map = lambda s: (s, 0)
        pe_row_elems = B * D
    else:
        x_k = x
        pe_k = pe
        x_block = lambda ts: (ts, B, D)
        pe_block = lambda ts: (ts, 1, D)
        index_map = lambda s: (s, 0, 0)
        pe_row_elems = D

    itemsize = jnp.dtype(x.dtype).itemsize
    x_row_bytes = B * D * itemsize
    vmem_cap = _vmem_capacity_bytes()

    ts = seq_tile if seq_tile is not None else _choose_seq_tile(S, x_row_bytes, vmem_cap)
    ts = max(1, min(ts, S))
    grid = (pl.cdiv(S, ts),)

    # Scoped-VMEM request sized from the actual working set (double-buffered x-in,
    # pe-in, out tiles) plus headroom; clamped so it stays inside the chip's VMEM.
    working_set = 2 * (2 * ts * x_row_bytes + ts * pe_row_elems * itemsize)
    vmem_limit = max(working_set + (4 << 20), 16 << 20)
    vmem_limit = min(vmem_limit, max(vmem_cap - (8 << 20), 16 << 20))

    out = pl.pallas_call(
        _pe_add_kernel,
        out_shape=jax.ShapeDtypeStruct(x_k.shape, x.dtype),
        grid=grid,
        in_specs=[
            pl.BlockSpec(x_block(ts), index_map),
            pl.BlockSpec(pe_block(ts), index_map),
        ],
        out_specs=pl.BlockSpec(x_block(ts), index_map),
        compiler_params=pltpu.CompilerParams(
            dimension_semantics=("parallel",),
            vmem_limit_bytes=int(vmem_limit),
        ),
        input_output_aliases=({0: 0} if in_place else {}),
    )(x_k, pe_k)

    return out.reshape(S, B, D) if flatten else out


if __name__ == "__main__":
    seq_length = 8
    batch = 2
    d_model = 32

    key = jax.random.PRNGKey(0)
    x = jax.random.normal(key, (seq_length, batch, d_model), dtype=jnp.float32)

    pe = make_positional_encoding(d_model, seq_length)  # deterministic "buffer"

    out = positional_encoding_forward(x, pe)
    out = jax.block_until_ready(out)

    # Correctness check against the plain-JAX reference of the PyTorch forward.
    ref = x + pe
    np.testing.assert_allclose(np.asarray(out), np.asarray(ref), rtol=1e-6, atol=1e-6)

    print("KERNEL_OK")
</pallas_src>

<mosaic_0001>
module attributes {stable_mosaic.version = 11 : i64} {
  func.func @_pe_add_kernel(%arg0: i32, %arg1: memref<8x64xf32, #tpu.memory_space<vmem>>, %arg2: memref<8x64xf32, #tpu.memory_space<vmem>>, %arg3: memref<8x64xf32, #tpu.memory_space<vmem>>) attributes {dimension_semantics = [#tpu.dimension_semantics<parallel>], iteration_bounds = array<i64: 1>, scalar_prefetch = 0 : i64, scratch_operands = 0 : i64, tpu.core_type = #tpu.core_type<tc>, window_params = [{transform_indices = @transform_0, window_bounds = array<i64: 8, 64>}, {transform_indices = @transform_1, window_bounds = array<i64: 8, 64>}, {transform_indices = @transform_2, window_bounds = array<i64: 8, 64>}]} {
    %c0 = arith.constant 0 : index
    %c0_0 = arith.constant 0 : index
    %0 = vector.load %arg1[%c0, %c0_0] : memref<8x64xf32, #tpu.memory_space<vmem>>, vector<8x64xf32>
    %c0_1 = arith.constant 0 : index
    %c0_2 = arith.constant 0 : index
    %1 = vector.load %arg2[%c0_1, %c0_2] : memref<8x64xf32, #tpu.memory_space<vmem>>, vector<8x64xf32>
    %2 = arith.addf %0, %1 : vector<8x64xf32>
    %c0_3 = arith.constant 0 : index
    %c0_4 = arith.constant 0 : index
    %3 = vector.load %arg3[%c0_3, %c0_4] : memref<8x64xf32, #tpu.memory_space<vmem>>, vector<8x64xf32>
    tpu.vector_store %arg3[%c0_3, %c0_4], %2 {strides = array<i32>} : memref<8x64xf32, #tpu.memory_space<vmem>>, vector<8x64xf32>,
    return
  }
  func.func @transform_0(%arg0: i32) -> (i32, i32) {
    %c0_i32 = arith.constant 0 : i32
    %c0_i32_0 = arith.constant 0 : i32
    return %arg0, %c0_i32 : i32, i32
  }
  func.func @transform_1(%arg0: i32) -> (i32, i32) {
    %c0_i32 = arith.constant 0 : i32
    %c0_i32_0 = arith.constant 0 : i32
    return %arg0, %c0_i32 : i32, i32
  }
  func.func @transform_2(%arg0: i32) -> (i32, i32) {
    %c0_i32 = arith.constant 0 : i32
    %c0_i32_0 = arith.constant 0 : i32
    return %arg0, %c0_i32 : i32, i32
  }
}

</mosaic_0001>

<bundles_post_ra>
// kernel: tpu_custom_call.1
= control target key start
LH: loop header
LB: loop body
LE: loop exit
PB: predicated region body
PF: predicated region fallthrough
CT: control target
= control target key end

     0   :  { %7 = vsyncpa [#allocation3], 0  ;;  %s171_s0 = inlined_call_operand.hbm [shape: f32[8,64], index: 0, kind: input, shape index: {}]   ;;  %s172_s1 = inlined_call_operand.hbm [shape: f32[8,64], index: 1, kind: input, shape index: {}]   ;;  %s173_s2 = inlined_call_operand.hbm [shape: f32[8,64], index: 2, kind: output, shape index: {}]  }
   0x1   :  { %8 = vsyncpa [#allocation6], 0 }
   0x2   :  { %9 = vsyncpa [#allocation4], 0  ;;  %s15_s11 = sshll.u32 %s171_s0, 4  ;;  %s144_s12 = smov [#allocation2]   ;;  %s16_s11 = int_to_ptr.hbm [resolvable:$true] %s15_s11 }
   0x3   :  { %s17_s13 = sshll.u32 %s144_s12, 4  ;;  %s26_s16 = sshll.u32 %s172_s1, 4  ;;  %s18_s13 = int_to_ptr.vmem [resolvable:$true] %s17_s13  ;;  %s27_s16 = int_to_ptr.hbm [resolvable:$true] %s26_s16 }
   0x4   :  { %20 = dma.hbm_to_vmem [thread:$0]  %s16_s11, 128, %s18_s13, [#allocation3]  }
   0x5   :  { %s145_s17 = smov [#allocation5]  }
   0x6   :  { %s28_s18 = sshll.u32 %s145_s17, 4  ;;  %s29_s18 = int_to_ptr.vmem [resolvable:$true] %s28_s18 }
   0x7   :  { %31 = dma.hbm_to_vmem [thread:$0]  %s27_s16, 128, %s29_s18, [#allocation6]  }
   0x8   :  { %138 = dma.done.wait [#allocation3], 128  }
   0x9   :  { %139 = vsyncadd [#allocation3], 4294967168 }
   0xa   :  { %140 = dma.done.wait [#allocation6], 128  }
   0xb   :  { %141 = vsyncadd [#allocation6], 4294967168  ;;  %s146_s19 = smov [#allocation7]   ;;  %s52_s22 = sshll.u32 %s173_s2, 4  ;;  %v40_v0 = vld [vmem:[#allocation2] sm:$0xff]  ;;  %v41_v1 = vld [vmem:[#allocation5] sm:$0xff]  ;;  %s53_s22 = int_to_ptr.hbm [resolvable:$true] %s52_s22 }
   0xc   :  { %s50_s0 = sshll.u32 %s146_s19, 4  ;;  %vm43_vm0 = vcmask 523264   ;;  %v42_v2 = vadd.f32 %v41_v1, %v40_v0  ;;  %s51_s0 = int_to_ptr.vmem [resolvable:$true] %s50_s0 }
   0xe   :  { %44 = vst.msk [vmem:[#allocation7] sm:$0xff] %vm43_vm0, %v42_v2 }
   0xf   :  { %55 = dma.vmem_to_hbm [thread:$0]  %s51_s0, 128, %s53_s22, [#allocation4]  }
  0x10   :  { %142 = dma.done.wait [#allocation4], 128  }
  0x11   :  { %143 = vsyncadd [#allocation4], 4294967168 }
  0x12   :  { %60 = vsyncpa [#allocation3], 1 }
  0x13   :  { %61 = vsyncpa [#allocation6], 1 }
  0x14   :  { %62 = vsyncpa [#allocation4], 1 }

</bundles_post_ra>
